<compile_context>
chip_gen: v5e
topology: v5e:2x2
jax: 0.10.0
libtpu: 0.0.40
codegen_flags: <defaults>
</compile_context>

<pallas_src>
import functools

import jax
import jax.numpy as jnp
from jax.experimental import pallas as pl
from jax.experimental.pallas import tpu as pltpu


LANE = 128      # last block dim must be a multiple of 128 (lane axis)
SUBLANE = 8     # second-to-last block dim must be a multiple of 8 (sublane axis)


def _round_up(n, m):
    return ((n + m - 1) // m) * m


def _fused_mlp_kernel(x_ref, w_ref, b_ref, o_ref, act_ref, *, num_layers):
    """One grid step == one Linear (+ReLU) layer for one batch tile.

    x_ref:   [tb, P]     padded network input tile (resident across the layer axis)
    w_ref:   [1, P, P]   this layer's zero-padded weight (streamed per layer step)
    b_ref:   [1, 1, P]   this layer's zero-padded bias
    o_ref:   [tb, P]     padded output tile (written only at the last layer)
    act_ref: [2, tb, P]  VMEM ping-pong activation buffer (persists over the grid)
    """
    l = pl.program_id(1)

    # Seed the activation buffer with the (padded) network input for this tile.
    @pl.when(l == 0)
    def _():
        act_ref[0] = x_ref[...].astype(jnp.float32)

    src = act_ref[l % 2]                                        # [tb, P]
    acc = jnp.dot(src, w_ref[0], preferred_element_type=jnp.float32)
    acc = acc + b_ref[0]                                        # [1, P] broadcast

    # Hidden layers: ReLU, hand the result to the next layer step (ping-pong).
    @pl.when(l < num_layers - 1)
    def _():
        act_ref[(l + 1) % 2] = jnp.maximum(acc, 0.0)

    # Last layer: no ReLU, emit the raw affine output.
    @pl.when(l == num_layers - 1)
    def _():
        o_ref[...] = acc.astype(o_ref.dtype)


def mlp_forward(x, params, *, batch_tile=128):
    """Fused MultiLayerPerceptron forward pass (one pallas_call for all layers).

    x:      [B, input_size] float32
    params: list of (w, b) per layer, w already transposed to [in, out], b [out]
    """
    num_layers = len(params)
    B, input_size = x.shape
    output_size = params[-1][0].shape[1]

    # One common padded width P for every layer so the activation buffer and the
    # stacked weights have a single static shape.
    widths = [input_size] + [w.shape[1] for (w, _) in params]
    P = max(_round_up(d, LANE) for d in widths)

    # Batch tiling: sublane-aligned tile, batch padded to a whole number of tiles.
    tb = min(_round_up(B, SUBLANE), _round_up(batch_tile, SUBLANE))
    B_pad = _round_up(B, tb)
    num_batch_tiles = B_pad // tb

    w_stack = jnp.stack([
        jnp.pad(w.astype(jnp.float32),
                ((0, P - w.shape[0]), (0, P - w.shape[1])))
        for (w, _) in params
    ])                                                          # [L, P, P]
    b_stack = jnp.stack([
        jnp.pad(b.astype(jnp.float32), (0, P - b.shape[0])).reshape(1, P)
        for (_, b) in params
    ])                                                          # [L, 1, P]
    x_pad = jnp.pad(x, ((0, B_pad - B), (0, P - input_size)))   # [B_pad, P]

    kernel = functools.partial(_fused_mlp_kernel, num_layers=num_layers)
    out_pad = pl.pallas_call(
        kernel,
        out_shape=jax.ShapeDtypeStruct((B_pad, P), x.dtype),
        grid_spec=pltpu.PrefetchScalarGridSpec(
            num_scalar_prefetch=0,
            grid=(num_batch_tiles, num_layers),
            in_specs=[
                # Network input tile: resident across the layer axis (DMA'd once
                # per batch tile).
                pl.BlockSpec((tb, P), lambda bt, l: (bt, 0)),
                # Per-layer weight/bias streamed over the layer axis; default
                # double-buffering overlaps layer-(l+1) DMA with layer-l compute.
                pl.BlockSpec((1, P, P), lambda bt, l: (l, 0, 0)),
                pl.BlockSpec((1, 1, P), lambda bt, l: (l, 0, 0)),
            ],
            out_specs=pl.BlockSpec((tb, P), lambda bt, l: (bt, 0)),
            scratch_shapes=[pltpu.VMEM((2, tb, P), jnp.float32)],
        ),
        compiler_params=pltpu.CompilerParams(
            # Batch tiles are independent (megacore); layers are sequential
            # (data dependence through the scratch buffer).
            dimension_semantics=("parallel", "arbitrary"),
        ),
    )(x_pad, w_stack, b_stack)

    return out_pad[:B, :output_size]


def init_mlp_params(key, input_size, hidden_size, output_size, num_layers):
    """Deterministic parameter init (PyTorch Linear shapes, weight pre-transposed)."""
    params = []
    for i in range(num_layers):
        in_sz = input_size if i == 0 else hidden_size
        out_sz = output_size if i == num_layers - 1 else hidden_size
        key, kw, kb = jax.random.split(key, 3)
        bound = 1.0 / jnp.sqrt(in_sz)
        w = jax.random.uniform(kw, (in_sz, out_sz), jnp.float32, -bound, bound)
        b = jax.random.uniform(kb, (out_sz,), jnp.float32, -bound, bound)
        params.append((w, b))
    return params


def mlp_reference(x, params):
    """Pure-JAX reference for correctness checking."""
    num_layers = len(params)
    out = x
    for i, (w, b) in enumerate(params):
        out = out @ w + b
        if i != num_layers - 1:
            out = jnp.maximum(out, 0.0)
    return out


if __name__ == "__main__":
    batch = 8
    input_size = 32
    hidden_size = 32
    output_size = 16
    num_layers = 3

    key = jax.random.PRNGKey(0)
    key, kx = jax.random.split(key)
    x = jax.random.normal(kx, (batch, input_size), jnp.float32)

    params = init_mlp_params(key, input_size, hidden_size, output_size, num_layers)

    out = mlp_forward(x, params)
    out = jax.block_until_ready(out)

    ref = mlp_reference(x, params)
    assert out.shape == (batch, output_size), out.shape
    assert jnp.allclose(out, ref, atol=1e-5, rtol=1e-5), "mismatch vs reference"

    print("KERNEL_OK")
</pallas_src>

<mosaic_0001>
module attributes {stable_mosaic.version = 11 : i64} {
  func.func @_fused_mlp_kernel(%arg0: i32, %arg1: i32, %arg2: memref<8x128xf32, #tpu.memory_space<vmem>>, %arg3: memref<1x128x128xf32, #tpu.memory_space<vmem>>, %arg4: memref<1x1x128xf32, #tpu.memory_space<vmem>>, %arg5: memref<8x128xf32, #tpu.memory_space<vmem>>, %arg6: memref<2x8x128xf32, #tpu.memory_space<vmem>>) attributes {dimension_semantics = [#tpu.dimension_semantics<parallel>, #tpu.dimension_semantics<arbitrary>], iteration_bounds = array<i64: 1, 3>, scalar_prefetch = 0 : i64, scratch_operands = 1 : i64, tpu.core_type = #tpu.core_type<tc>, window_params = [{transform_indices = @transform_0, window_bounds = array<i64: 8, 128>}, {transform_indices = @transform_1, window_bounds = array<i64: 1, 128, 128>}, {transform_indices = @transform_2, window_bounds = array<i64: 1, 1, 128>}, {transform_indices = @transform_3, window_bounds = array<i64: 8, 128>}]} {
    %c0_i32 = arith.constant 0 : i32
    %0 = arith.cmpi eq, %arg1, %c0_i32 : i32
    %1 = arith.extui %0 : i1 to i32
    %c0_i32_0 = arith.constant 0 : i32
    %2 = arith.cmpi ne, %1, %c0_i32_0 : i32
    scf.if %2 {
      %c0_16 = arith.constant 0 : index
      %c0_17 = arith.constant 0 : index
      %29 = vector.load %arg2[%c0_16, %c0_17] : memref<8x128xf32, #tpu.memory_space<vmem>>, vector<8x128xf32>
      %c0_18 = arith.constant 0 : index
      %c0_19 = arith.constant 0 : index
      %c0_20 = arith.constant 0 : index
      %30 = vector.load %arg6[%c0_18, %c0_19, %c0_20] : memref<2x8x128xf32, #tpu.memory_space<vmem>>, vector<1x8x128xf32>
      %31 = vector.shape_cast %30 : vector<1x8x128xf32> to vector<8x128xf32>
      %32 = vector.shape_cast %29 : vector<8x128xf32> to vector<1x8x128xf32>
      tpu.vector_store %arg6[%c0_18, %c0_19, %c0_20], %32 {strides = array<i32>} : memref<2x8x128xf32, #tpu.memory_space<vmem>>, vector<1x8x128xf32>,
    } else {
    }
    %c2_i32 = arith.constant 2 : i32
    %c0_i32_1 = arith.constant 0 : i32
    %3 = arith.cmpi eq, %c2_i32, %c0_i32_1 : i32
    %c1_i32 = arith.constant 1 : i32
    %4 = arith.select %3, %c1_i32, %c2_i32 : i32
    %5 = arith.remsi %arg1, %4 : i32
    %c0_i32_2 = arith.constant 0 : i32
    %6 = arith.cmpi ne, %5, %c0_i32_2 : i32
    %c0_i32_3 = arith.constant 0 : i32
    %7 = arith.cmpi slt, %5, %c0_i32_3 : i32
    %c0_i32_4 = arith.constant 0 : i32
    %8 = arith.cmpi slt, %4, %c0_i32_4 : i32
    %9 = arith.xori %7, %8 : i1
    %10 = arith.andi %9, %6 : i1
    %11 = arith.addi %5, %4 : i32
    %12 = arith.select %10, %11, %5 : i32
    %13 = arith.index_cast %12 : i32 to index
    %c0 = arith.constant 0 : index
    %c0_5 = arith.constant 0 : index
    %14 = vector.load %arg6[%13, %c0, %c0_5] : memref<2x8x128xf32, #tpu.memory_space<vmem>>, vector<1x8x128xf32>
    %15 = vector.shape_cast %14 : vector<1x8x128xf32> to vector<8x128xf32>
    %c0_6 = arith.constant 0 : index
    %c0_7 = arith.constant 0 : index
    %c0_8 = arith.constant 0 : index
    %16 = vector.load %arg3[%c0_6, %c0_7, %c0_8] : memref<1x128x128xf32, #tpu.memory_space<vmem>>, vector<1x128x128xf32>
    %17 = vector.shape_cast %16 : vector<1x128x128xf32> to vector<128x128xf32>
    %cst = arith.constant dense<0.000000e+00> : vector<8x128xf32>
    %18 = tpu.matmul %15, %17, %cst {dimension_numbers = #tpu.dot_dimension_numbers<[1], [0], [0], [1], [0, 0, 1, 1], [], []>} : vector<8x128xf32>, vector<128x128xf32>, vector<8x128xf32> -> vector<8x128xf32>
    %c0_9 = arith.constant 0 : index
    %c0_10 = arith.constant 0 : index
    %c0_11 = arith.constant 0 : index
    %19 = vector.load %arg4[%c0_9, %c0_10, %c0_11] : memref<1x1x128xf32, #tpu.memory_space<vmem>>, vector<1x1x128xf32>
    %20 = vector.shape_cast %19 : vector<1x1x128xf32> to vector<1x128xf32>
    %21 = vector.broadcast %20 : vector<1x128xf32> to vector<8x128xf32>
    %22 = arith.addf %18, %21 : vector<8x128xf32>
    %c2_i32_12 = arith.constant 2 : i32
    %23 = arith.cmpi slt, %arg1, %c2_i32_12 : i32
    %24 = arith.extui %23 : i1 to i32
    %c0_i32_13 = arith.constant 0 : i32
    %25 = arith.cmpi ne, %24, %c0_i32_13 : i32
    scf.if %25 {
      %cst_16 = arith.constant 0.000000e+00 : f32
      %29 = vector.broadcast %cst_16 : f32 to vector<8x128xf32>
      %30 = arith.maximumf %22, %29 : vector<8x128xf32>
      %c1_i32_17 = arith.constant 1 : i32
      %31 = arith.addi %arg1, %c1_i32_17 : i32
      %c2_i32_18 = arith.constant 2 : i32
      %c0_i32_19 = arith.constant 0 : i32
      %32 = arith.cmpi eq, %c2_i32_18, %c0_i32_19 : i32
      %c1_i32_20 = arith.constant 1 : i32
      %33 = arith.select %32, %c1_i32_20, %c2_i32_18 : i32
      %34 = arith.remsi %31, %33 : i32
      %c0_i32_21 = arith.constant 0 : i32
      %35 = arith.cmpi ne, %34, %c0_i32_21 : i32
      %c0_i32_22 = arith.constant 0 : i32
      %36 = arith.cmpi slt, %34, %c0_i32_22 : i32
      %c0_i32_23 = arith.constant 0 : i32
      %37 = arith.cmpi slt, %33, %c0_i32_23 : i32
      %38 = arith.xori %36, %37 : i1
      %39 = arith.andi %38, %35 : i1
      %40 = arith.addi %34, %33 : i32
      %41 = arith.select %39, %40, %34 : i32
      %42 = arith.index_cast %41 : i32 to index
      %c0_24 = arith.constant 0 : index
      %c0_25 = arith.constant 0 : index
      %43 = vector.load %arg6[%42, %c0_24, %c0_25] : memref<2x8x128xf32, #tpu.memory_space<vmem>>, vector<1x8x128xf32>
      %44 = vector.shape_cast %43 : vector<1x8x128xf32> to vector<8x128xf32>
      %45 = vector.shape_cast %30 : vector<8x128xf32> to vector<1x8x128xf32>
      tpu.vector_store %arg6[%42, %c0_24, %c0_25], %45 {strides = array<i32>} : memref<2x8x128xf32, #tpu.memory_space<vmem>>, vector<1x8x128xf32>,
    } else {
    }
    %c2_i32_14 = arith.constant 2 : i32
    %26 = arith.cmpi eq, %arg1, %c2_i32_14 : i32
    %27 = arith.extui %26 : i1 to i32
    %c0_i32_15 = arith.constant 0 : i32
    %28 = arith.cmpi ne, %27, %c0_i32_15 : i32
    scf.if %28 {
      %c0_16 = arith.constant 0 : index
      %c0_17 = arith.constant 0 : index
      %29 = vector.load %arg5[%c0_16, %c0_17] : memref<8x128xf32, #tpu.memory_space<vmem>>, vector<8x128xf32>
      tpu.vector_store %arg5[%c0_16, %c0_17], %22 {strides = array<i32>} : memref<8x128xf32, #tpu.memory_space<vmem>>, vector<8x128xf32>,
    } else {
    }
    return
  }
  func.func @transform_0(%arg0: i32, %arg1: i32) -> (i32, i32) {
    %c0_i32 = arith.constant 0 : i32
    %c0_i32_0 = arith.constant 0 : i32
    return %arg0, %c0_i32 : i32, i32
  }
  func.func @transform_1(%arg0: i32, %arg1: i32) -> (i32, i32, i32) {
    %c0_i32 = arith.constant 0 : i32
    %c0_i32_0 = arith.constant 0 : i32
    %c0_i32_1 = arith.constant 0 : i32
    return %arg1, %c0_i32, %c0_i32_0 : i32, i32, i32
  }
  func.func @transform_2(%arg0: i32, %arg1: i32) -> (i32, i32, i32) {
    %c0_i32 = arith.constant 0 : i32
    %c0_i32_0 = arith.constant 0 : i32
    %c0_i32_1 = arith.constant 0 : i32
    return %arg1, %c0_i32, %c0_i32_0 : i32, i32, i32
  }
  func.func @transform_3(%arg0: i32, %arg1: i32) -> (i32, i32) {
    %c0_i32 = arith.constant 0 : i32
    %c0_i32_0 = arith.constant 0 : i32
    return %arg0, %c0_i32 : i32, i32
  }
}

</mosaic_0001>

<bundles_post_ra>
// kernel: tpu_custom_call.1
= control target key start
LH: loop header
LB: loop body
LE: loop exit
PB: predicated region body
PF: predicated region fallthrough
CT: control target
= control target key end

     0   :  { %8 = vsyncpa [#allocation4], 0  ;;  %s912_s0 = inlined_call_operand.hbm [shape: f32[8,128], index: 0, kind: input, shape index: {}]   ;;  %s913_s1 = inlined_call_operand.hbm [shape: f32[3,128,128], index: 1, kind: input, shape index: {}]   ;;  %s914_s2 = inlined_call_operand.hbm [shape: f32[3,1,128], index: 2, kind: input, shape index: {}]   ;;  %s915_s3 = inlined_call_operand.hbm [shape: f32[8,128], index: 3, kind: output, shape index: {}]  }
   0x1   :  { %9 = vsyncpa [#allocation7], 0 }
   0x2   :  { %11 = vsyncpa [#allocation7 + $0x1], 0 }
   0x3   :  { %12 = vsyncpa [#allocation5], 0  ;;  %s752_s12 = smov 0   ;;  %s754_s13 = smov 0  }
   0x4   :  { %s756_s14 = smov 0   ;;  %s758_s15 = smov 0  }
   0x5   :  { %s760_s16 = smov 0   ;;  %s762_s17 = smov 0  }
   0x6 LB: > { %s27_s18 = sadd.s32 1, %s722_s16  ;;  %s63_s19 = sadd.s32 1, %s714_s14  ;;  %s726_s17 = sphi %s762_s17, %s18_s17   ;;  %s722_s16 = sphi %s760_s16, %s924_s16   ;;  %s718_s15 = sphi %s758_s15, %s923_s15   ;;  %s714_s14 = sphi %s756_s14, %s922_s14   ;;  %s710_s13 = sphi %s754_s13, %s921_s13   ;;  %s706_s12 = sphi %s752_s12, %s920_s12  }
   0x7   : > { %p28_p0 = scmp.ge.s32.totalorder %s27_s18, 3  ;;  %p70_p1 = scmp.ne.s32.totalorder %s714_s14, %s710_s13 }
   0x8   : > { %p71_p2 = scmp.eq.s32.totalorder %s726_s17, 0  ;;  %p493_p4 = scmp.lt.s32.totalorder %s726_s17, 3 }
   0x9   : > { %s926_s18 = smov (%p28_p0, %s27_s18), 0  ;;  %s166_s22 = sand.u32 1, %s726_s17  }
   0xa   : > { %p789_p3 = por %p71_p2, %p70_p1  ;;  %s60_s21 = ssub.s32 %s722_s16, %s926_s18 }
   0xb   : > { %p61_p5 = scmp.eq.s32.totalorder %s60_s21, 0  ;;  %s168_s23 = sand.u32 1, %s714_s14  }
   0xc   : > { %s468_s24 = sshll.u32 %s722_s16, 7  ;;  %s447_s26 = sshll.u32 %s168_s23, 7 }
   0xd   : > { %s800_s25 = scalar_select %p61_p5, %s714_s14, %s63_s19  }
   0xe   : > { %s175_s29 = scalar_lea.hbm %s913_s1, %s468_s24  ;;  %s170_s4 = scalar_lea.vmem [#allocation6], %s447_s26 }
   0xf   : > { %s176_s30 = sshll.u32 %s175_s29, 4  ;;  %s178_s5 = sshll.u32 %s170_s4, 4  ;;  %s177_s30 = int_to_ptr.hbm [resolvable:$true] %s176_s30  ;;  %s179_s5 = int_to_ptr.vmem [resolvable:$true] %s178_s5 }
  0x10   : > { %p811_p6 = pnand %p493_p4, %p789_p3  ;;  %s167_s7 = scalar_lea.sflag [#allocation7], %s166_s22 }
  0x11   : > { %s728_s8 = smov 128   ;;  %s729_s9 = smov 8  }
  0x12   : > { %488 = dma.hbm_to_vmem [thread:$0]  (!%p811_p6), %s177_s30, 2048, %s179_s5, %s167_s7, %s728_s8, %s728_s8, %s729_s9  }
  0x13   : > { %s818_s10 = sadd.s32 4294967295, %s726_s17   ;;  %p76_p7 = scmp.ne.s32.totalorder %s710_s13, %s706_s12 }
  0x14   : > { %p77_p8 = scmp.eq.s32.totalorder %s818_s10, 0  ;;  %p444_p9 = scmp.ge.s32.totalorder %s726_s17, 1 }
  0x15   : > { %p139_p10 = scmp.lt.s32.totalorder %s726_s17, 4  ;;  %s153_s22 = sshll.u32 %s912_s0, 4  ;;  %s154_s22 = int_to_ptr.hbm [resolvable:$true] %s153_s22 }
  0x16   : > { %p827_p11 = por %p77_p8, %p76_p7  ;;  %s730_s12 = smov [#allocation3]  }
  0x17   : > { %p831_p12 = pnand %p444_p9, %p139_p10  ;;  %s155_s24 = sshll.u32 %s730_s12, 4  ;;  %s156_s24 = int_to_ptr.vmem [resolvable:$true] %s155_s24 }
  0x18   : > { %s194_s28 = scalar_lea.hbm %s914_s2, %s722_s16  ;;  %s191_s30 = scalar_lea.vmem [#allocation8], %s168_s23 }
  0x19   : > { %p481_p13 = pneg %p831_p12  ;;  %s196_s29 = sshll.u32 %s194_s28, 4  ;;  %s197_s29 = int_to_ptr.hbm [resolvable:$true] %s196_s29 }
  0x1a   : > { %s198_s4 = sshll.u32 %s191_s30, 4  ;;  %207 = sbr.rel (%p831_p12) target bundleno = 225 (0xe1), region = 32  ;;  %s199_s4 = int_to_ptr.vmem [resolvable:$true] %s198_s4 }
  0x1b   : > { %p482_p0 = pnand %p481_p13, %p77_p8 }
  0x1c   : > { %491 = dma.hbm_to_vmem [thread:$0]  (!%p811_p6), %s197_s29, 16, %s199_s4, %s167_s7  }
  0x1d   : > { %484 = dma.hbm_to_vmem [thread:$0]  (!%p482_p0), %s154_s22, 128, %s156_s24, [#allocation4]  }
  0x1f   : > { %693 = dma.done.wait (%p77_p8), [#allocation4], 128  }
  0x20   : > { %695 = vsyncadd (%p77_p8), [#allocation4], 4294967168  ;;  %s214_s5 = sand.u32 1, %s818_s10   ;;  %s216_s23 = sand.u32 1, %s710_s13  }
  0x21   : > { %s452_s8 = sshll.u32 %s216_s23, 7  ;;  %s215_s9 = scalar_lea.sflag [#allocation7], %s214_s5 }
  0x22   : > { %s858_s20 = scalar_lea.vmem [#allocation6], %s452_s8 }
  0x23   : > { %697 = dma.done.wait (%p827_p11), %s215_s9, 2064  }
  0x24   : > { %699 = vsyncadd (%p827_p11), %s215_s9, 4294965232  ;;  %s864_s6 = scalar_lea.vmem [#allocation8], %s216_s23  ;;  %p453_p1 = scmp.ne.s32.totalorder %s718_s15, 0 }
  0x26   : > { %253 = sbr.rel (%p453_p1) target bundleno = 45 (0x2d), region = 48 }
  0x2b   : > { %v254_v0 = vld [vmem:[#allocation3] sm:$0xff] }
  0x2c   : > { %255 = vst [vmem:[#allocation2] sm:$0xff] %v254_v0 }
  0x2d PF: > { %v286_v1 = vld [vmem:[%s858_s20 + $0x78] sm:$0xff]  ;;  %v285_v2 = vld [vmem:[%s858_s20 + $0x70] sm:$0xff]  ;;  %s257_s7 = ssub.s32 0, %s718_s15  ;;  %v284_v3 = vld [vmem:[%s858_s20 + $0x68] sm:$0xff]  ;;  %p256_p2 = scmp.lt.s32.totalorder %s718_s15, 0 }
  0x2e   : > { %291 = vmatpush.msra.mxu0 %v286_v1  ;;  %s454_s11 = smin.u32 %s718_s15, %s257_s7  ;;  %v283_v4 = vld [vmem:[%s858_s20 + $0x60] sm:$0xff]  ;;  %v282_v5 = vld [vmem:[%s858_s20 + $0x58] sm:$0xff]  ;;  %v281_v6 = vld [vmem:[%s858_s20 + $0x50] sm:$0xff]  ;;  %p458_p4 = scmp.ge.s32.totalorder %s718_s15, 2 }
  0x2f   : > { %s259_s19 = sand.u32 1, %s454_s11   ;;  %v280_v7 = vld [vmem:[%s858_s20 + $0x48] sm:$0xff]  ;;  %v279_v8 = vld [vmem:[%s858_s20 + $0x40] sm:$0xff]  ;;  %v278_v9 = vld [vmem:[%s858_s20 + $0x38] sm:$0xff]  ;;  %s316_s26 = sadd.s32 (!%p458_p4), 1, %s718_s15 }
  0x30   : > { %292 = vmatpush.msra.mxu0 %v285_v2  ;;  %s260_s21 = ssub.s32 0, %s259_s19  ;;  %v277_v10 = vld [vmem:[%s858_s20 + $0x30] sm:$0xff]  ;;  %v276_v11 = vld [vmem:[%s858_s20 + $0x28] sm:$0xff]  ;;  %v275_v12 = vld [vmem:[%s858_s20 + $0x20] sm:$0xff]  ;;  %p317_p5 = scmp.lt.s32.totalorder (!%p458_p4), %s316_s26, 0 }
  0x31   : > { %s928_s21 = smov (!%p256_p2, %s260_s21), %s259_s19  ;;  %v274_v13 = vld [vmem:[%s858_s20 + $0x18] sm:$0xff]  ;;  %v273_v14 = vld [vmem:[%s858_s20 + $0x10] sm:$0xff]  ;;  %v272_v15 = vld [vmem:[%s858_s20 + $0x8] sm:$0xff]  ;;  %s318_s27 = ssub.s32 (!%p458_p4), 0, %s316_s26 }
  0x32   : > { %293 = vmatpush.msra.mxu0 %v284_v3  ;;  %p456_p3 = scmp.lt.s32.totalorder %s928_s21, 0  ;;  %s266_s22 = sadd.s32 2, %s928_s21  ;;  %v271_v16 = vld [vmem:[%s858_s20] sm:$0xff]  ;;  %v549_v18 = vld [vmem:[%s864_s6] ss:$0 sm:$0xff] }
  0x33   : > { %s459_s28 = smin.u32 (!%p458_p4), %s318_s27, %s316_s26 }
  0x34   : > { %294 = vmatpush.msra.mxu0 %v283_v4  ;;  %s930_s22 = smov (!%p456_p3, %s266_s22), %s928_s21  ;;  %s320_s29 = sand.u32 (!%p458_p4), 1, %s459_s28  }
  0x35   : > { %s457_s12 = sshll.u32 %s930_s22, 3  ;;  %s321_s30 = ssub.s32 (!%p458_p4), 0, %s320_s29 }
  0x36   : > { %295 = vmatpush.msra.mxu0 %v282_v5  ;;  %s269_s24 = scalar_lea.vmem [#allocation2], %s457_s12 }
  0x37   : > { %v270_v17 = vld [vmem:[%s269_s24] sm:$0xff] }
  0x38   : > { %296 = vmatpush.msra.mxu0 %v281_v6 }
  0x3a   : > { %297 = vmatpush.msra.mxu0 %v280_v7 }
  0x3c   : > { %298 = vmatpush.msra.mxu0 %v279_v8 }
  0x3e   : > { %299 = vmatpush.msra.mxu0 %v278_v9 }
  0x40   : > { %300 = vmatpush.msra.mxu0 %v277_v10 }
  0x42   : > { %301 = vmatpush.msra.mxu0 %v276_v11 }
  0x44   : > { %302 = vmatpush.msra.mxu0 %v275_v12 }
  0x46   : > { %303 = vmatpush.msra.mxu0 %v274_v13 }
  0x48   : > { %304 = vmatpush.msra.mxu0 %v273_v14 }
  0x4a   : > { %305 = vmatpush.msra.mxu0 %v272_v15 }
  0x4c   : > { %306 = vmatpush.msra.mxu0 %v271_v16 }
  0x4d   : > { %307 = vmatmul.f32.vlgmr.msra.gmra.mxu0 %v270_v17 }
  0xc7   : > { %314 = sbr.rel (%p458_p4) target bundleno = 211 (0xd3), region = 52 }
  0xca   : > { %v308_v19 = vpop.f32.mrf.mxu0 }
  0xcb   : > { %v309_v20 = vadd.f32 %v549_v18, %v308_v19 }
  0xcc   : > { %s932_s30 = smov (!%p317_p5, %s321_s30), %s320_s29 }
  0xcd   : > { %p461_p6 = scmp.lt.s32.totalorder %s932_s30, 0  ;;  %s327_s4 = sadd.s32 2, %s932_s30  ;;  %v315_v21 = vmax.f32 %v309_v20, 0.0 }
  0xcf   : > { %s934_s4 = smov (!%p461_p6, %s327_s4), %s932_s30 }
  0xd0   : > { %s462_s5 = sshll.u32 %s934_s4, 3 }
  0xd1   : > { %s330_s23 = scalar_lea.vmem [#allocation2], %s462_s5 }
  0xd2   : > { %331 = vst [vmem:[%s330_s23] sm:$0xff] %v315_v21 }
  0xd3 PF: > { %p463_p7 = scmp.ne.s32.totalorder %s718_s15, 2 }
  0xd5   : > { %335 = sbr.rel (%p463_p7) target bundleno = 219 (0xdb), region = 56 }
  0xda   : > { %336 = vst [vmem:[#allocation9] sm:$0xff] %v309_v20 }
  0xdb PF: > { %p495_p8 = scmp.eq.s32.totalorder %s818_s10, 2  ;;  %s347_s20 = sshll.u32 %s915_s3, 4  ;;  %s348_s20 = int_to_ptr.hbm [resolvable:$true] %s347_s20 }
  0xdc   : > { %s731_s6 = smov [#allocation9]  }
  0xdd   : > { %s345_s7 = sshll.u32 %s731_s6, 4  ;;  %s346_s7 = int_to_ptr.vmem [resolvable:$true] %s345_s7 }
  0xde   : > { %478 = dma.vmem_to_hbm [thread:$0]  (%p495_p8), %s346_s7, 128, %s348_s20, [#allocation5]  }
  0xdf   : > { %701 = dma.done.wait (%p495_p8), [#allocation5], 128  }
  0xe0   : > { %703 = vsyncadd (%p495_p8), [#allocation5], 4294967168 }
  0xe1 PF: > { %s18_s17 = sadd.s32 1, %s726_s17   ;;  %s920_s12 = smov %s710_s13 }
  0xe2   : > { %p15_p9 = scmp.ge.s32.totalorder %s18_s17, 5   ;;  %s921_s13 = smov %s714_s14 }
  0xe3   : > { %s922_s14 = smov %s800_s25  ;;  %s923_s15 = smov %s722_s16 }
  0xe4   : > { %s924_s16 = smov %s926_s18  ;;  %17 = sbr.rel (!%p15_p9) target bundleno = 6 (0x6), region = 101 }
  0xe9   :  { %361 = vsyncpa [#allocation4], 1 }
  0xea   :  { %363 = vsyncpa [#allocation4 + $0x1], 1 }
  0xeb   :  { %364 = vsyncpa [#allocation7], 1 }
  0xec   :  { %366 = vsyncpa [#allocation7 + $0x1], 1 }
  0xed   :  { %367 = vsyncpa [#allocation5], 1 }
  0xee   :  { %369 = vsyncpa [#allocation5 + $0x1], 1 }

</bundles_post_ra>
